<compile_context>
chip_gen: v7x
topology: tpu7x:2x2x1
jax: 0.10.0
libtpu: 0.0.40
codegen_flags: <defaults>
</compile_context>

<pallas_src>
import jax
import jax.numpy as jnp
from jax.experimental import pallas as pl
from jax.experimental.pallas import tpu as pltpu

LANES = 128
# 4096 rows x 128 lanes x 4 B = 2 MiB per f32 block.
MAX_TILE_ROWS = 4096


def _make_normalize_kernel(mean, inv_std):
    """Build an elementwise kernel with mean / 1/std baked in as constants."""

    def kernel(x_ref, o_ref):
        # Compute in f32 regardless of storage dtype (no-op cast for f32,
        # keeps bf16 inputs accurate); VPU handles the fused sub+mul.
        x = x_ref[...].astype(jnp.float32)
        o_ref[...] = ((x - mean) * inv_std).astype(o_ref.dtype)

    return kernel


def normalize(x, mean, std):
    """(x - mean) / std elementwise.  `mean` / `std` are Python scalars."""
    orig_shape = x.shape
    orig_dtype = x.dtype
    n_elems = x.size

    if n_elems == 0:
        return x

    mean_f = float(mean)
    inv_std_f = 1.0 / float(std)  # trace-time reciprocal -> vmul in-kernel

    # Lane-align the flat slab.  Fast path: no copies when the element count
    # is already a multiple of the 128-lane width (typical for NCHW images).
    pad = (-n_elems) % LANES
    x_flat = jnp.reshape(x, (-1,))
    if pad:
        # TODO(synk): the unaligned-tail case pays one pad copy + one slice
        # copy; a bulk+tail split would avoid one HBM pass but is unnecessary
        # for typical image shapes.
        x_flat = jnp.pad(x_flat, (0, pad))
    n_rows = x_flat.size // LANES
    x2d = jnp.reshape(x_flat, (n_rows, LANES))

    if n_rows <= MAX_TILE_ROWS:
        # One block covering the whole array (full-dim blocks need not be
        # (8,128)-divisible) -> single grid step, minimal overhead.
        tile_rows = n_rows
    else:
        # Multiple of 8, so the partial trailing block (if any) is legal and
        # masked by Pallas on store.
        tile_rows = MAX_TILE_ROWS
    grid = (pl.cdiv(n_rows, tile_rows),)

    bytes_per_elem = jnp.dtype(orig_dtype).itemsize
    out2d = pl.pallas_call(
        _make_normalize_kernel(mean_f, inv_std_f),
        out_shape=jax.ShapeDtypeStruct((n_rows, LANES), orig_dtype),
        grid=grid,
        in_specs=[pl.BlockSpec((tile_rows, LANES), lambda i: (i, 0))],
        out_specs=pl.BlockSpec((tile_rows, LANES), lambda i: (i, 0)),
        compiler_params=pltpu.CompilerParams(
            dimension_semantics=("parallel",),
        ),
        cost_estimate=pl.CostEstimate(
            flops=2 * n_elems,
            transcendentals=0,
            bytes_accessed=2 * n_elems * bytes_per_elem,
        ),
    )(x2d)

    out_flat = jnp.reshape(out2d, (-1,))
    if pad:
        out_flat = out_flat[:n_elems]
    return jnp.reshape(out_flat, orig_shape)


if __name__ == "__main__":
    key = jax.random.PRNGKey(0)
    mean = 0.5
    std = 0.25

    # Primary small NCHW input: batch=2, channels=4, spatial=16x16.
    x = jax.random.normal(key, (2, 4, 16, 16), dtype=jnp.float32)
    out = jax.block_until_ready(normalize(x, mean, std))
    ref = (x - mean) / std
    assert out.shape == x.shape
    assert out.dtype == x.dtype
    assert jnp.allclose(out, ref, atol=1e-6, rtol=1e-6)

    # Multi-block path (grid > 1 with a partial trailing block).
    k1, k2 = jax.random.split(key)
    x_big = jax.random.normal(k1, (8, 3, 160, 160), dtype=jnp.float32)
    out_big = jax.block_until_ready(normalize(x_big, mean, std))
    assert jnp.allclose(out_big, (x_big - mean) / std, atol=1e-6, rtol=1e-6)

    # Unaligned (non-multiple-of-128) fallback path.
    x_odd = jax.random.normal(k2, (2, 3, 5, 7), dtype=jnp.float32)
    out_odd = jax.block_until_ready(normalize(x_odd, mean, std))
    assert out_odd.shape == x_odd.shape
    assert jnp.allclose(out_odd, (x_odd - mean) / std, atol=1e-6, rtol=1e-6)

    # bf16 storage dtype (compute promoted to f32 in-kernel).
    x_bf16 = jax.random.normal(key, (2, 4, 16, 16), dtype=jnp.bfloat16)
    out_bf16 = jax.block_until_ready(normalize(x_bf16, mean, std))
    ref_bf16 = ((x_bf16.astype(jnp.float32) - mean) / std).astype(jnp.bfloat16)
    assert out_bf16.dtype == jnp.bfloat16
    assert jnp.allclose(
        out_bf16.astype(jnp.float32), ref_bf16.astype(jnp.float32),
        atol=1e-2, rtol=1e-2)

    print("KERNEL_OK")
</pallas_src>

<mosaic_0001>
module attributes {stable_mosaic.version = 11 : i64} {
  func.func @kernel(%arg0: i32, %arg1: memref<16x128xf32, #tpu.memory_space<vmem>>, %arg2: memref<16x128xf32, #tpu.memory_space<vmem>>) attributes {dimension_semantics = [#tpu.dimension_semantics<parallel>], iteration_bounds = array<i64: 1>, scalar_prefetch = 0 : i64, scratch_operands = 0 : i64, tpu.core_type = #tpu.core_type<tc>, window_params = [{transform_indices = @transform_0, window_bounds = array<i64: 16, 128>}, {transform_indices = @transform_1, window_bounds = array<i64: 16, 128>}]} {
    %c0 = arith.constant 0 : index
    %c0_0 = arith.constant 0 : index
    %0 = vector.load %arg1[%c0, %c0_0] : memref<16x128xf32, #tpu.memory_space<vmem>>, vector<16x128xf32>
    %cst = arith.constant 5.000000e-01 : f32
    %1 = vector.broadcast %cst : f32 to vector<16x128xf32>
    %2 = arith.subf %0, %1 : vector<16x128xf32>
    %cst_1 = arith.constant 4.000000e+00 : f32
    %3 = vector.broadcast %cst_1 : f32 to vector<16x128xf32>
    %4 = arith.mulf %2, %3 : vector<16x128xf32>
    %c0_2 = arith.constant 0 : index
    %c0_3 = arith.constant 0 : index
    %5 = vector.load %arg2[%c0_2, %c0_3] : memref<16x128xf32, #tpu.memory_space<vmem>>, vector<16x128xf32>
    tpu.vector_store %arg2[%c0_2, %c0_3], %4 {strides = array<i32>} : memref<16x128xf32, #tpu.memory_space<vmem>>, vector<16x128xf32>,
    return
  }
  func.func @transform_0(%arg0: i32) -> (i32, i32) {
    %c0_i32 = arith.constant 0 : i32
    %c0_i32_0 = arith.constant 0 : i32
    return %arg0, %c0_i32 : i32, i32
  }
  func.func @transform_1(%arg0: i32) -> (i32, i32) {
    %c0_i32 = arith.constant 0 : i32
    %c0_i32_0 = arith.constant 0 : i32
    return %arg0, %c0_i32 : i32, i32
  }
}

</mosaic_0001>

<bundles_post_ra>
// kernel: tpu_custom_call.1
= control target key start
LH: loop header
LB: loop body
LE: loop exit
PB: predicated region body
PF: predicated region fallthrough
CT: control target
= control target key end

     0   :  { %6 = vsyncpa [#allocation3], 0  ;;  %s146_s0 = inlined_call_operand.hbm [shape: f32[16,128], index: 0, kind: input, shape index: {}]   ;;  %s147_s1 = inlined_call_operand.hbm [shape: f32[16,128], index: 1, kind: output, shape index: {}]  }
   0x1   :  { %7 = vsyncpa [#allocation4], 0  ;;  %s102_s6 = smov [#allocation2]   ;;  %s54_s10 = scalar_lea.hbm %s146_s0, 256 }
   0x2   :  { %s13_s7 = sshll.u32 %s102_s6, 4  ;;  %p55_p0 = scmp.ne.s32.totalorder %s146_s0, %s54_s10  ;;  %s14_s7 = int_to_ptr.vmem [resolvable:$true] %s13_s7 }
   0x3   :  { %p58_p1 = scmp.lt.u32.totalorder %s54_s10, %s146_s0 }
   0x5   :  { %p60_p2 = pnand %p58_p1, %p55_p0 }
   0x7   :  { %63 = shalt.err (!%p60_p2)
}
   0x8   :  { %s64_s15 = scalar_lea.vmem %s14_s7, 256  ;;  %p69_p4 = scmp.lt.s32.totalorder %s14_s7, %s14_s7 }
   0x9   :  { %p65_p3 = scmp.ne.s32.totalorder %s14_s7, %s64_s15  ;;  %p70_p5 = scmp.lt.s32.totalorder %s64_s15, %s64_s15 }
   0xb   :  { %p71_p6 = por %p70_p5, %p69_p4 }
   0xd   :  { %p72_p7 = pnand %p71_p6, %p65_p3 }
   0xf   :  { %75 = shalt.err (!%p72_p7)
}
  0x10   :  { %s103_s16 = smov 128   ;;  %s104_s17 = smov 8  }
  0x11   :  { %19 = dma.hbm_to_vmem [thread:$0]  %s146_s0, 256, %s14_s7, [#allocation3], %s103_s16, %s103_s16, %s104_s17  }
  0x12   :  { %98 = dma.done.wait [#allocation3], 256  }
  0x13   :  { %99 = vsyncadd [#allocation3], 4294967040  ;;  %v23_v0 = vld [vmem:[#allocation2] sm:$0xff]  ;;  %v24_v1 = vld [vmem:[#allocation2 + $0x8] sm:$0xff]  ;;  %s105_s20 = smov [#allocation5]  }
  0x14   :  { %s36_s21 = sshll.u32 %s105_s20, 4  ;;  %v48_v2 = vadd.f32 -0.5, %v23_v0  ;;  %v49_v3 = vadd.f32 -0.5, %v24_v1  ;;  %s37_s21 = int_to_ptr.vmem [resolvable:$true] %s36_s21 }
  0x15   :  { %s76_s22 = scalar_lea.vmem %s37_s21, 256  ;;  %p81_p9 = scmp.lt.s32.totalorder %s37_s21, %s37_s21 }
  0x16   :  { %v27_v4 = vmul.f32 4.0, %v48_v2  ;;  %v28_v5 = vmul.f32 4.0, %v49_v3  ;;  %p77_p8 = scmp.ne.s32.totalorder %s37_s21, %s76_s22  ;;  %p82_p10 = scmp.lt.s32.totalorder %s76_s22, %s76_s22 }
  0x18   :  { %29 = vst [vmem:[#allocation5] sm:$0xff] %v27_v4  ;;  %30 = vst [vmem:[#allocation5 + $0x8] sm:$0xff] %v28_v5  ;;  %p83_p11 = por %p82_p10, %p81_p9 }
  0x1a   :  { %p84_p12 = pnand %p83_p11, %p77_p8 }
  0x1c   :  { %87 = shalt.err (!%p84_p12)
}
  0x1d   :  { %s88_s24 = scalar_lea.hbm %s147_s1, 256 }
  0x1e   :  { %p89_p13 = scmp.ne.s32.totalorder %s147_s1, %s88_s24  ;;  %p92_p0 = scmp.lt.u32.totalorder %s88_s24, %s147_s1 }
  0x20   :  { %p94_p1 = pnand %p92_p0, %p89_p13 }
  0x22   :  { %97 = shalt.err (!%p94_p1)
}
  0x23   :  { %42 = dma.vmem_to_hbm [thread:$0]  %s37_s21, 256, %s147_s1, [#allocation4], %s103_s16, %s103_s16, %s104_s17  }
  0x24   :  { %100 = dma.done.wait [#allocation4], 256  }
  0x25   :  { %101 = vsyncadd [#allocation4], 4294967040 }
  0x26   :  { %46 = vsyncpa [#allocation3], 1 }
  0x27   :  { %47 = vsyncpa [#allocation4], 1 }

</bundles_post_ra>
